<compile_context>
chip_gen: v6e
topology: v6e:2x2x1
jax: 0.10.0
libtpu: 0.0.40
codegen_flags: <defaults>
</compile_context>

<pallas_src>
import jax
import jax.numpy as jnp
from jax.experimental import pallas as pl
from jax.experimental.pallas import tpu as pltpu

# ---- static sizes (small, consistent with the module) ----------------------
B = 2                       # example batch
C, H, W = 4, 16, 16
D_OBS = C * H * W           # 1024 flattened observation features
D_RS = 6                    # robot_state dim
D_ACT = 2                   # action dim
D_COMB = D_RS + D_ACT       # 8, == cat([robot_state, action], dim=1)
H1 = 32                     # hidden width after observation encoder
H2 = 32                     # hidden width after fusion layer
D_OUT = 1                   # discriminator logit

TILE_B_MAX = 256            # batch rows per grid step (review: 256-512)

# ---- packed small-parameter slab (32 lanes wide, 8-row-aligned regions) -----
R_B1 = 0                    # row 0:        b1                      (1, 32)
R_W2A = 8                   # rows 8..39:   w2[:32, :]              (32, 32)
R_W2C = R_W2A + H1          # rows 40..47:  w2[32:40, :]            (8, 32)
R_B2 = R_W2C + D_COMB       # row 48:       b2                      (1, 32)
R_W3T = R_B2 + 8            # row 56:       w3^T                    (1, 32)
R_B3 = R_W3T + 8            # row 64:       b3 (col 0 real)         (1, 32)
SLAB_ROWS = R_B3 + 8        # 72 rows x 32 lanes f32  (~9 KiB in HBM)


def _discrim_kernel(obs_ref, comb_ref, w1_ref, slab_ref, out_ref):
    f32 = jnp.float32
    obs = obs_ref[...]                               # (tile_b, 1024) bf16
    comb = comb_ref[...]                             # (tile_b, 8)    f32

    b1 = slab_ref[pl.ds(R_B1, 1), :]                 # (1, 32)
    w2a = slab_ref[pl.ds(R_W2A, H1), :]              # (32, 32)
    w2c = slab_ref[pl.ds(R_W2C, D_COMB), :]          # (8, 32)
    b2 = slab_ref[pl.ds(R_B2, 1), :]                 # (1, 32)
    w3t = slab_ref[pl.ds(R_W3T, 1), :]               # (1, 32) == w3.T
    b3 = slab_ref[pl.ds(R_B3, 1), :][:, :1]          # (1, 1)

    # layer 1: observation encoder. bf16 operands, f32 accumulate (native MXU).
    h1 = jnp.dot(obs, w1_ref[...], preferred_element_type=f32) + b1
    h1 = jnp.maximum(h1, 0.0)                        # (tile_b, 32) f32

    # layer 2: fusion == relu(concat([h1, comb], 1) @ W2 + b2), split into a
    # K=32 and a K=8 MXU pass so no in-kernel concat / relayout is needed.
    z2 = (jnp.dot(h1, w2a, preferred_element_type=f32)
          + jnp.dot(comb, w2c, preferred_element_type=f32) + b2)
    h2 = jnp.maximum(z2, 0.0)                        # (tile_b, 32) f32

    # layer 3: 1-wide logit head as a lane reduction against w3^T; the store
    # is the narrow (tile_b, 1) output block (negligible masked-store cost).
    out_ref[...] = jnp.sum(h2 * w3t, axis=-1, keepdims=True) + b3


def _pack_params(params):
    """Cast the big weight to bf16 and pack all small tensors into one slab."""
    w1, b1, w2, b2, w3, b3 = params
    w1_bf16 = w1.astype(jnp.bfloat16)                          # (1024, 32)

    slab = jnp.zeros((SLAB_ROWS, H2), jnp.float32)
    slab = slab.at[R_B1, :].set(b1.reshape(H1))
    slab = slab.at[R_W2A:R_W2A + H1, :].set(w2[:H1, :])
    slab = slab.at[R_W2C:R_W2C + D_COMB, :].set(w2[H1:, :])
    slab = slab.at[R_B2, :].set(b2.reshape(H2))
    slab = slab.at[R_W3T, :].set(w3.reshape(H2))               # w3 transposed
    slab = slab.at[R_B3, 0].set(b3.reshape(()))
    return w1_bf16, slab


def _choose_batch_tiling(bv: int):
    """Return (tile_b, num_tiles, b_pad).

    A batch block must either equal the full batch (any size) or be a multiple
    of 8 rows.  We prefer (a) no padding (avoids a full HBM copy of obs),
    (b) tiles as large as possible up to TILE_B_MAX, (c) >= 2 grid steps at
    larger batches so the "parallel" axis shards across v7x's 2 TensorCores.
    """
    if bv % 8 != 0 or bv <= 8:
        if bv <= TILE_B_MAX:
            return bv, 1, bv                     # single full-array block
        # TODO(synk): ragged last tile via in-kernel row mask would avoid this
        # extra HBM read+write of the biggest input for odd large batches.
        tile = TILE_B_MAX
        b_pad = pl.cdiv(bv, tile) * tile
        return tile, b_pad // tile, b_pad
    # multiple of 8: largest multiple-of-8 divisor <= TILE_B_MAX -> no padding.
    tile = min(TILE_B_MAX, bv)
    tile -= tile % 8
    while bv % tile != 0:
        tile -= 8
    # v7x megacore: at larger batches ensure >= 2 grid steps (no-op on v5e/v6e).
    if bv // tile < 2 and bv >= 128 and (bv // 2) % 8 == 0:
        tile = bv // 2
    return tile, bv // tile, bv


def discriminator_forward(observations, robot_state, action, packed_params):
    """JAX wrapper reproducing Discriminator.forward."""
    w1_bf16, slab = packed_params
    bv = observations.shape[0]

    # --- glue (matches the PyTorch forward exactly) --------------------------
    # combined = torch.cat([robot_state, action.float()], dim=1)
    combined = jnp.concatenate(
        [robot_state.astype(jnp.float32), action.astype(jnp.float32)], axis=1)
    # observations.view(B, -1) on NCHW; streamed to the MXU as bf16.
    obs_flat = observations.reshape(bv, -1).astype(jnp.bfloat16)

    # --- batch tiling ---------------------------------------------------------
    tile_b, num_tiles, b_pad = _choose_batch_tiling(bv)
    if b_pad != bv:
        obs_flat = jnp.pad(obs_flat, ((0, b_pad - bv), (0, 0)))
        combined = jnp.pad(combined, ((0, b_pad - bv), (0, 0)))

    out = pl.pallas_call(
        _discrim_kernel,
        out_shape=jax.ShapeDtypeStruct((b_pad, D_OUT), jnp.float32),
        grid=(num_tiles,),
        in_specs=[
            pl.BlockSpec((tile_b, D_OBS), lambda i: (i, 0)),
            pl.BlockSpec((tile_b, D_COMB), lambda i: (i, 0)),
            # weights: constant block index -> fetched once across the grid.
            pl.BlockSpec((D_OBS, H1), lambda i: (0, 0)),
            pl.BlockSpec((SLAB_ROWS, H2), lambda i: (0, 0)),
        ],
        out_specs=pl.BlockSpec((tile_b, D_OUT), lambda i: (i, 0)),
        compiler_params=pltpu.CompilerParams(
            dimension_semantics=("parallel",)),
    )(obs_flat, combined, w1_bf16, slab)

    return out[:bv]                                   # already (bv, 1)


def _init_params(key):
    k1, k2, k3 = jax.random.split(key, 3)
    w1 = jax.random.normal(k1, (D_OBS, H1), jnp.float32) / jnp.sqrt(D_OBS)
    b1 = jnp.zeros((1, H1), jnp.float32)
    w2 = jax.random.normal(k2, (H1 + D_COMB, H2), jnp.float32) / jnp.sqrt(H1 + D_COMB)
    b2 = jnp.zeros((1, H2), jnp.float32)
    w3 = jax.random.normal(k3, (H2, D_OUT), jnp.float32) / jnp.sqrt(H2)
    b3 = jnp.zeros((1, D_OUT), jnp.float32)
    return (w1, b1, w2, b2, w3, b3)


def _reference(observations, robot_state, action, params):
    """Pure-JAX f32 reference for the correctness check."""
    w1, b1, w2, b2, w3, b3 = params
    combined = jnp.concatenate(
        [robot_state.astype(jnp.float32), action.astype(jnp.float32)], axis=1)
    x = observations.astype(jnp.float32).reshape(observations.shape[0], -1)
    h1 = jnp.maximum(x @ w1 + b1, 0.0)
    h2 = jnp.maximum(jnp.concatenate([h1, combined], axis=1) @ w2 + b2, 0.0)
    return h2 @ w3 + b3


if __name__ == "__main__":
    key = jax.random.PRNGKey(0)
    k_obs, k_rs, k_act, k_par = jax.random.split(key, 4)

    observations = jax.random.normal(k_obs, (B, C, H, W), jnp.float32)   # NCHW
    robot_state = jax.random.normal(k_rs, (B, D_RS), jnp.float32)
    # action is non-float in the torch code (hence .float()); use int32 here.
    action = jax.random.randint(k_act, (B, D_ACT), -2, 3, jnp.int32)

    params = _init_params(k_par)
    packed = _pack_params(params)          # computed once; resident across calls

    out = discriminator_forward(observations, robot_state, action, packed)
    out = jax.block_until_ready(out)

    ref = _reference(observations, robot_state, action, params)
    assert out.shape == (B, D_OUT), out.shape
    # Tolerance reflects bf16 operand precision on the big matmul (which also
    # matches TPU's default f32 matmul precision); values are O(1).
    assert jnp.allclose(out, ref, atol=5e-2, rtol=5e-2), (out, ref)

    print("KERNEL_OK")
</pallas_src>

<mosaic_0001>
module attributes {stable_mosaic.version = 11 : i64} {
  func.func @_discrim_kernel(%arg0: i32, %arg1: memref<2x1024xbf16, #tpu.memory_space<vmem>>, %arg2: memref<2x8xf32, #tpu.memory_space<vmem>>, %arg3: memref<1024x32xbf16, #tpu.memory_space<vmem>>, %arg4: memref<72x32xf32, #tpu.memory_space<vmem>>, %arg5: memref<2x1xf32, #tpu.memory_space<vmem>>) attributes {dimension_semantics = [#tpu.dimension_semantics<parallel>], iteration_bounds = array<i64: 1>, scalar_prefetch = 0 : i64, scratch_operands = 0 : i64, tpu.core_type = #tpu.core_type<tc>, window_params = [{transform_indices = @transform_0, window_bounds = array<i64: 2, 1024>}, {transform_indices = @transform_1, window_bounds = array<i64: 2, 8>}, {pipeline_mode = #tpu.pipeline_mode<synchronous>, transform_indices = @transform_2, window_bounds = array<i64: 1024, 32>}, {pipeline_mode = #tpu.pipeline_mode<synchronous>, transform_indices = @transform_3, window_bounds = array<i64: 72, 32>}, {transform_indices = @transform_4, window_bounds = array<i64: 2, 1>}]} {
    %c0 = arith.constant 0 : index
    %c0_0 = arith.constant 0 : index
    %0 = vector.load %arg1[%c0, %c0_0] : memref<2x1024xbf16, #tpu.memory_space<vmem>>, vector<2x1024xbf16>
    %c0_1 = arith.constant 0 : index
    %c0_2 = arith.constant 0 : index
    %1 = vector.load %arg2[%c0_1, %c0_2] : memref<2x8xf32, #tpu.memory_space<vmem>>, vector<2x8xf32>
    %c0_3 = arith.constant 0 : index
    %c0_4 = arith.constant 0 : index
    %2 = vector.load %arg4[%c0_3, %c0_4] : memref<72x32xf32, #tpu.memory_space<vmem>>, vector<1x32xf32>
    %c8 = arith.constant 8 : index
    %c0_5 = arith.constant 0 : index
    %3 = vector.load %arg4[%c8, %c0_5] : memref<72x32xf32, #tpu.memory_space<vmem>>, vector<32x32xf32>
    %c40 = arith.constant 40 : index
    %c0_6 = arith.constant 0 : index
    %4 = vector.load %arg4[%c40, %c0_6] : memref<72x32xf32, #tpu.memory_space<vmem>>, vector<8x32xf32>
    %c48 = arith.constant 48 : index
    %c0_7 = arith.constant 0 : index
    %5 = vector.load %arg4[%c48, %c0_7] : memref<72x32xf32, #tpu.memory_space<vmem>>, vector<1x32xf32>
    %c56 = arith.constant 56 : index
    %c0_8 = arith.constant 0 : index
    %6 = vector.load %arg4[%c56, %c0_8] : memref<72x32xf32, #tpu.memory_space<vmem>>, vector<1x32xf32>
    %c64 = arith.constant 64 : index
    %c0_9 = arith.constant 0 : index
    %7 = vector.load %arg4[%c64, %c0_9] : memref<72x32xf32, #tpu.memory_space<vmem>>, vector<1x32xf32>
    %8 = vector.extract_strided_slice %7 {offsets = [0, 0], sizes = [1, 1], strides = [1, 1]} : vector<1x32xf32> to vector<1x1xf32>
    %c0_10 = arith.constant 0 : index
    %c0_11 = arith.constant 0 : index
    %9 = vector.load %arg3[%c0_10, %c0_11] : memref<1024x32xbf16, #tpu.memory_space<vmem>>, vector<1024x32xbf16>
    %cst = arith.constant dense<0.000000e+00> : vector<2x32xf32>
    %10 = tpu.matmul %0, %9, %cst {dimension_numbers = #tpu.dot_dimension_numbers<[1], [0], [0], [1], [0, 0, 1, 1], [], []>} : vector<2x1024xbf16>, vector<1024x32xbf16>, vector<2x32xf32> -> vector<2x32xf32>
    %11 = vector.broadcast %2 : vector<1x32xf32> to vector<2x32xf32>
    %12 = arith.addf %10, %11 : vector<2x32xf32>
    %cst_12 = arith.constant 0.000000e+00 : f32
    %13 = vector.broadcast %cst_12 : f32 to vector<2x32xf32>
    %14 = arith.maximumf %12, %13 : vector<2x32xf32>
    %cst_13 = arith.constant dense<0.000000e+00> : vector<2x32xf32>
    %15 = tpu.matmul %14, %3, %cst_13 {dimension_numbers = #tpu.dot_dimension_numbers<[1], [0], [0], [1], [0, 0, 1, 1], [], []>} : vector<2x32xf32>, vector<32x32xf32>, vector<2x32xf32> -> vector<2x32xf32>
    %cst_14 = arith.constant dense<0.000000e+00> : vector<2x32xf32>
    %16 = tpu.matmul %1, %4, %cst_14 {dimension_numbers = #tpu.dot_dimension_numbers<[1], [0], [0], [1], [0, 0, 1, 1], [], []>} : vector<2x8xf32>, vector<8x32xf32>, vector<2x32xf32> -> vector<2x32xf32>
    %17 = arith.addf %15, %16 : vector<2x32xf32>
    %18 = vector.broadcast %5 : vector<1x32xf32> to vector<2x32xf32>
    %19 = arith.addf %17, %18 : vector<2x32xf32>
    %cst_15 = arith.constant 0.000000e+00 : f32
    %20 = vector.broadcast %cst_15 : f32 to vector<2x32xf32>
    %21 = arith.maximumf %19, %20 : vector<2x32xf32>
    %22 = vector.broadcast %6 : vector<1x32xf32> to vector<2x32xf32>
    %23 = arith.mulf %21, %22 : vector<2x32xf32>
    %cst_16 = arith.constant dense<0.000000e+00> : vector<2xf32>
    %24 = vector.multi_reduction <add>, %23, %cst_16 [1] : vector<2x32xf32> to vector<2xf32>
    %25 = vector.shape_cast %24 : vector<2xf32> to vector<2x1xf32>
    %26 = vector.broadcast %8 : vector<1x1xf32> to vector<2x1xf32>
    %27 = arith.addf %25, %26 : vector<2x1xf32>
    %c0_17 = arith.constant 0 : index
    %c0_18 = arith.constant 0 : index
    %28 = vector.load %arg5[%c0_17, %c0_18] : memref<2x1xf32, #tpu.memory_space<vmem>>, vector<2x1xf32>
    tpu.vector_store %arg5[%c0_17, %c0_18], %27 {strides = array<i32>} : memref<2x1xf32, #tpu.memory_space<vmem>>, vector<2x1xf32>,
    return
  }
  func.func @transform_0(%arg0: i32) -> (i32, i32) {
    %c0_i32 = arith.constant 0 : i32
    %c0_i32_0 = arith.constant 0 : i32
    return %arg0, %c0_i32 : i32, i32
  }
  func.func @transform_1(%arg0: i32) -> (i32, i32) {
    %c0_i32 = arith.constant 0 : i32
    %c0_i32_0 = arith.constant 0 : i32
    return %arg0, %c0_i32 : i32, i32
  }
  func.func @transform_2(%arg0: i32) -> (i32, i32) {
    %c0_i32 = arith.constant 0 : i32
    %c0_i32_0 = arith.constant 0 : i32
    %c0_i32_1 = arith.constant 0 : i32
    return %c0_i32, %c0_i32_0 : i32, i32
  }
  func.func @transform_3(%arg0: i32) -> (i32, i32) {
    %c0_i32 = arith.constant 0 : i32
    %c0_i32_0 = arith.constant 0 : i32
    %c0_i32_1 = arith.constant 0 : i32
    return %c0_i32, %c0_i32_0 : i32, i32
  }
  func.func @transform_4(%arg0: i32) -> (i32, i32) {
    %c0_i32 = arith.constant 0 : i32
    %c0_i32_0 = arith.constant 0 : i32
    return %arg0, %c0_i32 : i32, i32
  }
}

</mosaic_0001>

<bundles_post_ra>
// kernel: tpu_custom_call.1
= control target key start
LH: loop header
LB: loop body
LE: loop exit
PB: predicated region body
PF: predicated region fallthrough
CT: control target
= control target key end

     0   :  { %v1187_v22 = vmov 1966171168   ;;  %v166_v24 = vlaneseq  ;;  %vm764_vm0 = vcmask 64512   ;;  %vm1189_vm1 = vmmov 0   ;;  %s1456_s2 = inlined_call_operand.vmem [shape: bf16[1024,32], index: 2, kind: input, shape index: {}]   ;;  %s1457_s0 = inlined_call_operand.vmem [shape: bf16[2,1024], index: 0, kind: input, shape index: {}]   ;;  %s1458_s3 = inlined_call_operand.vmem [shape: f32[72,32], index: 3, kind: input, shape index: {}]   ;;  %s1459_s1 = inlined_call_operand.vmem [shape: f32[2,8], index: 1, kind: input, shape index: {}]   ;;  %s1460_s4 = inlined_call_operand.vmem [shape: f32[2,1], index: 4, kind: output, shape index: {}]  }
   0x1   :  { %v1122_v0 = vld [vmem:[%s1456_s2 + $0x78] sm:$0xff]   ;;  %v1126_v4 = vld [vmem:[%s1456_s2 + $0x70] sm:$0xff]   ;;  %v1130_v8 = vld [vmem:[%s1456_s2 + $0x68] sm:$0xff]   ;;  %v164_v23 = vunpack.c.l.s4 %v1187_v22  ;;  %vm838_vm2 = vcmask 261120   ;;  %vm923_vm3 = vcmask 254976   ;;  %vm932_vm4 = vcmask 1024  }
   0x2   :  { %v1123_v1 = vld [vmem:[%s1456_s2 + $0xf8] sm:$0xff]   ;;  %1008 = vmatprep.subr.bf16.mxu0 %v1122_v0  ;;  %v1127_v5 = vld [vmem:[%s1456_s2 + $0xf0] sm:$0xff]   ;;  %v1131_v9 = vld [vmem:[%s1456_s2 + $0xe8] sm:$0xff]   ;;  %v167_v30 = vshrl.u32 %v166_v24, 7 }
   0x3   :  { %v1124_v2 = vld [vmem:[%s1456_s2 + $0x38] sm:$0xff]   ;;  %1030 = vmatprep.subr.bf16.mxu1 %v1123_v1  ;;  %v1128_v6 = vld [vmem:[%s1456_s2 + $0x30] sm:$0xff]   ;;  %v1132_v10 = vld [vmem:[%s1456_s2 + $0x28] sm:$0xff]   ;;  %v165_v29 = vunpack.c.0.s8 %v164_v23 }
   0x4   :  { %v1125_v3 = vld [vmem:[%s1456_s2 + $0xb8] sm:$0xff]   ;;  %1009 = vmatpush3.bf16.msra.mxu0 %v1124_v2  ;;  %v1129_v7 = vld [vmem:[%s1456_s2 + $0xb0] sm:$0xff]   ;;  %v1133_v11 = vld [vmem:[%s1456_s2 + $0xa8] sm:$0xff]  }
   0x5   :  { %1031 = vmatpush3.bf16.msra.mxu1 %v1125_v3  ;;  %1010 = vmatprep.subr.bf16.mxu0 %v1126_v4  ;;  %v1134_v12 = vld [vmem:[%s1456_s2 + $0x60] sm:$0xff]   ;;  %v1138_v16 = vld [vmem:[%s1456_s2 + $0x58] sm:$0xff]   ;;  %v1142_v20 = vld [vmem:[%s1456_s2 + $0x50] sm:$0xff]   ;;  %v1305_v35 = vsub.s32 %v165_v29, %v167_v30 }
   0x6   :  { %1032 = vmatprep.subr.bf16.mxu1 %v1127_v5  ;;  %v1135_v13 = vld [vmem:[%s1456_s2 + $0xe0] sm:$0xff]   ;;  %v1139_v17 = vld [vmem:[%s1456_s2 + $0xd8] sm:$0xff]   ;;  %v1143_v21 = vld [vmem:[%s1456_s2 + $0xd0] sm:$0xff]  }
   0x7   :  { %v1136_v14 = vld [vmem:[%s1456_s2 + $0x20] sm:$0xff]   ;;  %v1140_v18 = vld [vmem:[%s1456_s2 + $0x18] sm:$0xff]   ;;  %v1144_v25 = vld [vmem:[%s1456_s2 + $0x10] sm:$0xff]  }
   0x8   :  { %1011 = vmatpush3.bf16.msra.mxu0 %v1128_v6  ;;  %v1137_v15 = vld [vmem:[%s1456_s2 + $0xa0] sm:$0xff]   ;;  %v1141_v19 = vld [vmem:[%s1456_s2 + $0x98] sm:$0xff]   ;;  %v1145_v26 = vld [vmem:[%s1456_s2 + $0x90] sm:$0xff]  }
   0x9   :  { %1033 = vmatpush3.bf16.msra.mxu1 %v1129_v7  ;;  %1012 = vmatprep.subr.bf16.mxu0 %v1130_v8  ;;  %v1146_v27 = vld [vmem:[%s1456_s2 + $0x48] sm:$0xff]   ;;  %v1150_v33 = vld [vmem:[%s1456_s2 + $0x40] sm:$0xff]   ;;  %v1155_v41 = vld [vmem:[%s1456_s2 + $0x178] sm:$0xff]  }
   0xa   :  { %1034 = vmatprep.subr.bf16.mxu1 %v1131_v9  ;;  %v1147_v28 = vld [vmem:[%s1456_s2 + $0xc8] sm:$0xff]   ;;  %v1151_v34 = vld [vmem:[%s1456_s2 + $0xc0] sm:$0xff]   ;;  %v1156_v42 = vld [vmem:[%s1456_s2 + $0x1f8] sm:$0xff]  }
   0xb   :  { %v1148_v31 = vld [vmem:[%s1456_s2 + $0x8] sm:$0xff]   ;;  %v1152_v36 = vld [vmem:[%s1456_s2] sm:$0xff]   ;;  %v1157_v47 = vld [vmem:[%s1456_s2 + $0x138] sm:$0xff]  }
   0xc   :  { %1013 = vmatpush3.bf16.msra.mxu0 %v1132_v10  ;;  %v1149_v32 = vld [vmem:[%s1456_s2 + $0x88] sm:$0xff]   ;;  %v1153_v37 = vld [vmem:[%s1456_s2 + $0x80] sm:$0xff]   ;;  %v1159_v50 = vld [vmem:[%s1456_s2 + $0x170] sm:$0xff]  }
   0xd   :  { %1035 = vmatpush3.bf16.msra.mxu1 %v1133_v11  ;;  %1014 = vmatprep.subr.bf16.mxu0 %v1134_v12  ;;  %v18_v38 = vld [vmem:[%s1457_s0] sm:$0xff]  ;;  %v1158_v52 = vld [vmem:[%s1456_s2 + $0x1b8] sm:$0xff]   ;;  %v1160_v54 = vld [vmem:[%s1456_s2 + $0x1f0] sm:$0xff]  }
   0xe   :  { %1036 = vmatprep.subr.bf16.mxu1 %v1135_v13  ;;  %v162_v39 = vcombine.high %v18_v38, %v18_v38  ;;  %v169_v40 = vrot.slane %v18_v38, %v1305_v35  ;;  %v1161_v55 = vld [vmem:[%s1456_s2 + $0x130] sm:$0xff]   ;;  %v1163_v57 = vld [vmem:[%s1456_s2 + $0x168] sm:$0xff]   ;;  %v1167_v61 = vld [vmem:[%s1456_s2 + $0x160] sm:$0xff]  }
   0xf   :  { %v1162_v58 = vld [vmem:[%s1456_s2 + $0x1b0] sm:$0xff]   ;;  %v1164_v59 = vld [vmem:[%s1456_s2 + $0x1e8] sm:$0xff]   ;;  %v1168_v63 = vld [vmem:[%s1456_s2 + $0x1e0] sm:$0xff]  }
  0x10   :  { %1015 = vmatpush3.bf16.msra.mxu0 %v1136_v14  ;;  %v177_v43 = vcombine.high %v169_v40, %v169_v40  ;;  %v185_v44 = vrot.slane %v169_v40, %v1305_v35  ;;  %v1325_v45 = vrot.slane %v162_v39, %v1305_v35  ;;  %v1165_v60 = vld [vmem:[%s1456_s2 + $0x128] sm:$0xff]   ;;  %v1169_v0 = vld [vmem:[%s1456_s2 + $0x120] sm:$0xff]   ;;  %v1171_v1 = vld [vmem:[%s1456_s2 + $0x158] sm:$0xff]  }
  0x11   :  { %1037 = vmatpush3.bf16.msra.mxu1 %v1137_v15  ;;  %1016 = vmatprep.subr.bf16.mxu0 %v1138_v16  ;;  %v1166_v62 = vld [vmem:[%s1456_s2 + $0x1a8] sm:$0xff]   ;;  %v1170_v2 = vld [vmem:[%s1456_s2 + $0x1a0] sm:$0xff]   ;;  %v1172_v3 = vld [vmem:[%s1456_s2 + $0x1d8] sm:$0xff]  }
  0x12   :  { %1038 = vmatprep.subr.bf16.mxu1 %v1139_v17  ;;  %v199_v46 = vrot.slane %v177_v43, %v1305_v35  ;;  %v178_v48 = vcombine.high %v1325_v45, %v1325_v45  ;;  %v207_v49 = vcombine.high %v185_v44, %v185_v44  ;;  %v1173_v4 = vld [vmem:[%s1456_s2 + $0x118] sm:$0xff]   ;;  %v1175_v5 = vld [vmem:[%s1456_s2 + $0x150] sm:$0xff]   ;;  %v1179_v9 = vld [vmem:[%s1456_s2 + $0x148] sm:$0xff]   ;;  %v192_v17 = vrot.slane %v1325_v45, %v1305_v35 }
  0x13   :  { %v1174_v6 = vld [vmem:[%s1456_s2 + $0x198] sm:$0xff]   ;;  %v1176_v7 = vld [vmem:[%s1456_s2 + $0x1d0] sm:$0xff]   ;;  %v1180_v11 = vld [vmem:[%s1456_s2 + $0x1c8] sm:$0xff]  }
  0x14   :  { %1017 = vmatpush3.bf16.msra.mxu0 %v1140_v18  ;;  %635 = vmatprep.mubr.bf16.mxu0 %v199_v46  ;;  %v209_v51 = vcombine.high %v199_v46, %v199_v46  ;;  %v206_v53 = vrot.slane %v178_v48, %v1305_v35  ;;  %v1177_v8 = vld [vmem:[%s1456_s2 + $0x110] sm:$0xff]   ;;  %v1181_v12 = vld [vmem:[%s1456_s2 + $0x108] sm:$0xff]   ;;  %v1183_v13 = vld [vmem:[%s1456_s2 + $0x140] sm:$0xff]  }
  0x15   :  { %1039 = vmatpush3.bf16.msra.mxu1 %v1141_v19  ;;  %1018 = vmatprep.subr.bf16.mxu0 %v1142_v20  ;;  %v1178_v10 = vld [vmem:[%s1456_s2 + $0x190] sm:$0xff]   ;;  %v1182_v14 = vld [vmem:[%s1456_s2 + $0x188] sm:$0xff]   ;;  %v1184_v15 = vld [vmem:[%s1456_s2 + $0x1c0] sm:$0xff]   ;;  %v208_v19 = vcombine.high %v192_v17, %v192_v17  ;;  %v1188_v20 = vmov 0.0  }
  0x16   :  { %1040 = vmatprep.subr.bf16.mxu1 %v1143_v21  ;;  %675 = vmatprep.mubr.bf16.mxu1 %v209_v51  ;;  %v210_v56 = vcombine.high %v206_v53, %v206_v53  ;;  %v1185_v16 = vld [vmem:[%s1456_s2 + $0x100] sm:$0xff]   ;;  %v23_v22 = vld [vmem:[%s1458_s3 + $0x18] sm:$0xff]  ;;  %v25_v23 = vld [vmem:[%s1458_s3 + $0x28] sm:$0xff] }
  0x17   :  { %v1186_v18 = vld [vmem:[%s1456_s2 + $0x180] sm:$0xff]   ;;  %v22_v24 = vld [vmem:[%s1458_s3 + $0x10] sm:$0xff] }
  0x18   :  { %1019 = vmatpush3.bf16.msra.mxu0 %v1144_v25  ;;  %v24_v21 = vld [vmem:[%s1458_s3 + $0x20] sm:$0xff]  ;;  %v21_v25 = vld [vmem:[%s1458_s3 + $0x8] sm:$0xff] }
  0x19   :  { %1041 = vmatpush3.bf16.msra.mxu1 %v1145_v26  ;;  %1020 = vmatprep.subr.bf16.mxu0 %v1146_v27  ;;  %v19_v26 = vld [vmem:[%s1459_s1] sm:$0x3] }
  0x1a   :  { %1042 = vmatprep.subr.bf16.mxu1 %v1147_v28 }
  0x1c   :  { %1021 = vmatpush3.bf16.msra.mxu0 %v1148_v31 }
  0x1d   :  { %1043 = vmatpush3.bf16.msra.mxu1 %v1149_v32  ;;  %1022 = vmatprep.subr.bf16.mxu0 %v1150_v33 }
  0x1e   :  { %1044 = vmatprep.subr.bf16.mxu1 %v1151_v34 }
  0x20   :  { %1023 = vmatpush3.bf16.msra.mxu0 %v1152_v36  ;;  %v938_v36 = vld [vmem:[%s1458_s3] ss:$0 sm:$0xff] }
  0x21   :  { %1045 = vmatpush3.bf16.msra.mxu1 %v1153_v37  ;;  %1052 = vmatprep.subr.bf16.mxu0 %v1155_v41 }
  0x22   :  { %1074 = vmatprep.subr.bf16.mxu1 %v1156_v42 }
  0x23   :  { %636 = vmatmul.mubr.bf16.vlgmr.msra.gmra.mxu0 %v185_v44 }
  0x24   :  { %1053 = vmatpush3.bf16.msra.mxu0 %v1157_v47  ;;  %676 = vmatmul.mubr.bf16.vlgmr.msra.gmra.mxu1 %v207_v49 }
  0x25   :  { %1054 = vmatprep.subr.bf16.mxu0 %v1159_v50  ;;  %1075 = vmatpush3.bf16.msra.mxu1 %v1158_v52 }
  0x26   :  { %715 = vmatprep.mubr.bf16.mxu0 %v206_v53  ;;  %1076 = vmatprep.subr.bf16.mxu1 %v1160_v54 }
  0x27   :  { %755 = vmatprep.mubr.bf16.mxu1 %v210_v56 }
  0x28   :  { %1055 = vmatpush3.bf16.msra.mxu0 %v1161_v55  ;;  %v1005_v55 = vld [vmem:[%s1458_s3 + $0x30] ss:$0 sm:$0xff] }
  0x29   :  { %1056 = vmatprep.subr.bf16.mxu0 %v1163_v57  ;;  %1077 = vmatpush3.bf16.msra.mxu1 %v1162_v58 }
  0x2a   :  { %1078 = vmatprep.subr.bf16.mxu1 %v1164_v59 }
  0x2c   :  { %1057 = vmatpush3.bf16.msra.mxu0 %v1165_v60  ;;  %v1006_v60 = vld [vmem:[%s1458_s3 + $0x38] ss:$0 sm:$0xff] }
  0x2d   :  { %1058 = vmatprep.subr.bf16.mxu0 %v1167_v61  ;;  %1079 = vmatpush3.bf16.msra.mxu1 %v1166_v62 }
  0x2e   :  { %1080 = vmatprep.subr.bf16.mxu1 %v1168_v63 }
  0x30   :  { %1059 = vmatpush3.bf16.msra.mxu0 %v1169_v0  ;;  %v1007_v0 = vld [vmem:[%s1458_s3 + $0x40] ss:$0 sm:$0xff] }
  0x31   :  { %1060 = vmatprep.subr.bf16.mxu0 %v1171_v1  ;;  %1081 = vmatpush3.bf16.msra.mxu1 %v1170_v2 }
  0x32   :  { %1082 = vmatprep.subr.bf16.mxu1 %v1172_v3 }
  0x34   :  { %1061 = vmatpush3.bf16.msra.mxu0 %v1173_v4 }
  0x35   :  { %1062 = vmatprep.subr.bf16.mxu0 %v1175_v5  ;;  %1083 = vmatpush3.bf16.msra.mxu1 %v1174_v6 }
  0x36   :  { %1084 = vmatprep.subr.bf16.mxu1 %v1176_v7 }
  0x38   :  { %1063 = vmatpush3.bf16.msra.mxu0 %v1177_v8 }
  0x39   :  { %1064 = vmatprep.subr.bf16.mxu0 %v1179_v9  ;;  %1085 = vmatpush3.bf16.msra.mxu1 %v1178_v10 }
  0x3a   :  { %1086 = vmatprep.subr.bf16.mxu1 %v1180_v11 }
  0x3c   :  { %1065 = vmatpush3.bf16.msra.mxu0 %v1181_v12 }
  0x3d   :  { %1066 = vmatprep.subr.bf16.mxu0 %v1183_v13  ;;  %1087 = vmatpush3.bf16.msra.mxu1 %v1182_v14 }
  0x3e   :  { %1088 = vmatprep.subr.bf16.mxu1 %v1184_v15 }
  0x40   :  { %1067 = vmatpush3.bf16.msra.mxu0 %v1185_v16 }
  0x41   :  { %1089 = vmatpush3.bf16.msra.mxu1 %v1186_v18  ;;  %1103 = vmatprep.subr.mxu0 %v1188_v20 }
  0x42   :  { %1108 = vmatprep.subr.mxu1 %v1188_v20 }
  0x43   :  { %716 = vmatmul.mubr.bf16.vlgmr.msra.gmra.mxu0 %v192_v17 }
  0x44   :  { %756 = vmatmul.mubr.bf16.vlgmr.msra.gmra.mxu1 %v208_v19  ;;  %1104 = vmatpush3.msra.mxu0 %v25_v23 }
  0x45   :  { %1109 = vmatpush3.msra.mxu1 %v24_v21  ;;  %1105 = vmatprep.mubr.msk.f32.mxu0 %vm1189_vm1, %v1188_v20 }
  0x46   :  { %1110 = vmatprep.subr.mxu1 %v1188_v20  ;;  %1116 = vmatprep.mubr.msk.f32.mxu1 %vm1189_vm1, %v1188_v20 }
  0x47   :  { %1111 = vmatpush3.msra.mxu1 %v23_v22 }
  0x48   :  { %1112 = vmatprep.subr.mxu1 %v1188_v20 }
  0x49   :  { %1113 = vmatpush3.msra.mxu1 %v22_v24 }
  0x4a   :  { %1114 = vmatprep.subr.mxu1 %v1188_v20 }
  0x4b   :  { %1106 = vmatmul.mubr.msk.f32.vlgmr.msra.gmra.mxu0 %vm764_vm0, %v19_v26  ;;  %1115 = vmatpush3.msra.mxu1 %v21_v25 }
  0xe3   :  { %v1024_v27 = vpop.f32.mrf.mxu0 }
  0xe4   :  { %v1046_v28 = vpop.f32.mrf.mxu1 }
  0xe5   :  { %v1025_v29 = vpop.f32.mrf.mxu0 }
  0xe6   :  { %v1047_v30 = vpop.f32.mrf.mxu1  ;;  %v1026_v35 = vadd.f32 %v1025_v29, %v1024_v27 }
  0xe7   :  { %v1027_v31 = vpop.f32.mrf.mxu0  ;;  %v1048_v38 = vadd.f32 %v1047_v30, %v1046_v28 }
  0xe8   :  { %v1049_v32 = vpop.f32.mrf.mxu1  ;;  %v638_v37 = vadd.f32 %v1026_v35, %v938_v36 }
  0xe9   :  { %v1028_v33 = vpop.f32.mrf.mxu0 }
  0xea   :  { %v1050_v34 = vpop.f32.mrf.mxu1  ;;  %v678_v42 = vadd.f32 %v1048_v38, %v638_v37 }
 0x103   :  { %v1068_v39 = vpop.f32.mrf.mxu0 }
 0x104   :  { %v1090_v40 = vpop.f32.mrf.mxu1 }
 0x105   :  { %v1069_v41 = vpop.f32.mrf.mxu0 }
 0x106   :  { %v1070_v43 = vadd.f32 %v1069_v41, %v1068_v39  ;;  %v1091_v44 = vpop.f32.mrf.mxu1 }
 0x107   :  { %v1071_v45 = vpop.f32.mrf.mxu0  ;;  %v1092_v47 = vadd.f32 %v1091_v44, %v1090_v40 }
 0x108   :  { %v718_v46 = vadd.f32 %v1070_v43, %v678_v42  ;;  %v1093_v48 = vpop.f32.mrf.mxu1 }
 0x109   :  { %v1072_v49 = vpop.f32.mrf.mxu0 }
 0x10a   :  { %v758_v50 = vadd.f32 %v1092_v47, %v718_v46  ;;  %v1094_v51 = vpop.f32.mrf.mxu1 }
 0x10b   :  { %v834_v53 = vpop.f32.mrf.mxu0 }
 0x10c   :  { %v763_v52 = vmax.f32 %v758_v50, 0.0 }
 0x10d   :  { %v1107_v54 = vpop.f32.mrf.mxu0 }
 0x10e   :  { %1117 = vmatmul.mubr.msk.f32.vlgmr.msra.gmra.mxu1 %vm838_vm2, %v763_v52 }
 0x1ce   :  { %v908_v56 = vpop.f32.mrf.mxu1 }
 0x1cf   :  { %v909_v57 = vadd.f32 %v908_v56, %v834_v53 }
 0x1d0   :  { %v1118_v58 = vpop.f32.mrf.mxu1 }
 0x1d1   :  { %v916_v59 = vadd.f32 %v1005_v55, %v909_v57 }
 0x1d3   :  { %v917_v61 = vmax.f32 %v916_v59, 0.0 }
 0x1d5   :  { %v922_v62 = vmul.f32 %v1006_v60, %v917_v61 }
 0x1d7   :  { %v924_v63 = vsel %vm923_vm3, %v922_v62, 0.0 }
 0x1d8   :  { %925 = vadd.xlane.f32.xlu0 %v924_v63 }
 0x261   :  { %v926_v1 = vpop.xlane.xlu0 %925 }
 0x262   :  { %v931_v2 = vadd.f32 %v1007_v0, %v926_v1 }
 0x264   :  { %933 = vst.msk [vmem:[%s1460_s4] sm:$0x3] %vm932_vm4, %v931_v2 }

</bundles_post_ra>
